<compile_context>
chip_gen: v7x
topology: tpu7x:2x2x1
jax: 0.10.0
libtpu: 0.0.40
codegen_flags: <defaults>
</compile_context>

<pallas_src>
import jax
import jax.numpy as jnp
from jax.experimental import pallas as pl
from jax.experimental.pallas import tpu as pltpu

LANE = 128     # vreg lane width
SUBLANE = 8    # f32 sublane count


def _round_up(x, m):
    return (x + m - 1) // m * m


def _tile_vmem_bytes(shape, dtype):
    """VMEM footprint of one block, honoring (sublane, 128) layout padding."""
    itemsize = jnp.dtype(dtype).itemsize
    sublane = SUBLANE * max(1, 4 // itemsize)        # 8 f32, 16 bf16, 32 int8
    if len(shape) == 1:
        rows, cols = 1, shape[0]
    else:
        rows, cols = shape[-2], shape[-1]
    lead = 1
    for d in shape[:-2]:
        lead *= d
    return lead * _round_up(rows, sublane) * _round_up(cols, LANE) * itemsize


def mlp_kernel(x_ref, w1_ref, b1_ref, w2_ref, b2_ref, o_ref):
    # fc1 on the MXU with f32 accumulation; bias add + ReLU in f32 on the VPU
    # (v5e has no bf16 VPU path, so the VPU work is kept f32 on purpose).
    h = jnp.dot(x_ref[...], w1_ref[...], preferred_element_type=jnp.float32)
    h = jnp.maximum(h + b1_ref[...], 0.0)                     # nn.ReLU
    # fc2 on the MXU: cast h to the (possibly bf16) weight dtype, accumulate
    # f32, add bias.  Output block is unpadded (tb, 20); the masked store is
    # cheap while the HBM writeback is 6.4x smaller than a 128-lane padded one.
    y = jnp.dot(h.astype(w2_ref.dtype), w2_ref[...],
                preferred_element_type=jnp.float32)
    o_ref[...] = (y + b2_ref[...]).astype(o_ref.dtype)


def network_forward(x, w1, b1, w2, b2, *, block_b=None,
                    compute_dtype=jnp.bfloat16):
    """Forward pass of Network: fc2(relu(fc1(x))).

    x:  (B, dim)        w1: (dim, hidden)   b1: (hidden,) or (1, hidden)
    w2: (hidden, 20)    b2: (20,)  or (1, 20)
    compute_dtype: dtype of the streamed x and resident weights (bf16 default
    halves the input HBM stream); accumulation / bias / ReLU / output are f32.
    block_b: batch-tile size; None -> generation-aware default.
    """
    B, dim = x.shape
    hidden = w1.shape[1]
    out_features = w2.shape[1]
    compute_dtype = jnp.dtype(x.dtype if compute_dtype is None else compute_dtype)
    out_dtype = jnp.float32

    # --- generation-aware VMEM budget & default tile ------------------------
    try:
        vmem_cap = int(getattr(pltpu.get_tpu_info(), "vmem_capacity_bytes",
                               64 * 1024 * 1024))
    except Exception:
        vmem_cap = 64 * 1024 * 1024                  # conservative (v7x-sized)
    if vmem_cap >= 100 * 1024 * 1024:                # v5e / v6e: 128 MiB
        budget = 96 * 1024 * 1024
        default_block_b = 16384
    else:                                            # v7x: 64 MiB per TC
        budget = 44 * 1024 * 1024
        default_block_b = 8192
    vmem_limit = min(vmem_cap - 4 * 1024 * 1024, budget + 8 * 1024 * 1024)
    if block_b is None:
        block_b = default_block_b

    # --- lane-dense padding of the hidden dim (zero pad => identical math) --
    hidden_p = _round_up(hidden, LANE)
    w1p = jnp.pad(w1.astype(compute_dtype), ((0, 0), (0, hidden_p - hidden)))
    b1p = jnp.pad(b1.reshape(1, -1).astype(jnp.float32),
                  ((0, 0), (0, hidden_p - hidden)))
    # fc2: pad only the contraction (hidden) dim; keep the 20-wide output
    # unpadded so the dominant HBM writeback stream carries no zero padding.
    w2p = jnp.pad(w2.astype(compute_dtype), ((0, hidden_p - hidden), (0, 0)))
    b2p = b2.reshape(1, -1).astype(jnp.float32)
    xc = x.astype(compute_dtype)
    in_bytes = compute_dtype.itemsize

    # --- VMEM accounting with (8,128) layout padding ------------------------
    resident = 2 * (_tile_vmem_bytes((dim, hidden_p), compute_dtype)
                    + _tile_vmem_bytes((1, hidden_p), jnp.float32)
                    + _tile_vmem_bytes((hidden_p, out_features), compute_dtype)
                    + _tile_vmem_bytes((1, out_features), jnp.float32))

    def _vmem_bytes(t):
        # double-buffered streamed x + output blocks
        stream = 2 * (_tile_vmem_bytes((t, dim), compute_dtype)
                      + _tile_vmem_bytes((t, out_features), out_dtype))
        # in-kernel intermediates: h (f32), h cast for fc2's MXU, y (f32)
        scratch = (_tile_vmem_bytes((t, hidden_p), jnp.float32)
                   + _tile_vmem_bytes((t, hidden_p), compute_dtype)
                   + _tile_vmem_bytes((t, out_features), jnp.float32))
        return resident + stream + scratch

    # --- batch tile selection -----------------------------------------------
    b8 = _round_up(B, SUBLANE)
    tb = min(_round_up(block_b, SUBLANE), b8)
    # Keep >= 2 grid steps when possible so ("parallel",) shards across both
    # TensorCores on v7x and the pipeline has something to overlap.
    if b8 >= 2 * SUBLANE:
        tb = min(tb, _round_up(pl.cdiv(b8, 2), SUBLANE))
    while tb > SUBLANE and _vmem_bytes(tb) > budget:
        tb = _round_up(tb // 2, SUBLANE)

    b_pad = _round_up(B, tb)
    if b_pad != B:
        xc = jnp.pad(xc, ((0, b_pad - B), (0, 0)))
    grid = (b_pad // tb,)

    resident_hbm = (dim * hidden_p * in_bytes + hidden_p * 4
                    + hidden_p * out_features * in_bytes + out_features * 4)
    cost = pl.CostEstimate(
        flops=2 * b_pad * (dim * hidden_p + hidden_p * out_features),
        transcendentals=0,
        bytes_accessed=(b_pad * dim * in_bytes
                        + b_pad * out_features * jnp.dtype(out_dtype).itemsize
                        + resident_hbm),
    )

    out_padded = pl.pallas_call(
        mlp_kernel,
        out_shape=jax.ShapeDtypeStruct((b_pad, out_features), out_dtype),
        grid=grid,
        in_specs=[
            pl.BlockSpec((tb, dim), lambda i: (i, 0)),          # streamed x tiles
            pl.BlockSpec((dim, hidden_p), lambda i: (0, 0)),    # resident weights
            pl.BlockSpec((1, hidden_p), lambda i: (0, 0)),
            pl.BlockSpec((hidden_p, out_features), lambda i: (0, 0)),
            pl.BlockSpec((1, out_features), lambda i: (0, 0)),
        ],
        out_specs=pl.BlockSpec((tb, out_features), lambda i: (i, 0)),
        compiler_params=pltpu.CompilerParams(
            dimension_semantics=("parallel",),                  # megacore sharding
            vmem_limit_bytes=int(vmem_limit),
        ),
        cost_estimate=cost,
    )(xc, w1p, b1p, w2p, b2p)

    return out_padded[:B]


def init_params(key, dim, hidden_size=100, out_features=20):
    """Deterministic parameter init (uniform, torch.nn.Linear-style bounds)."""
    k1, k2, k3, k4 = jax.random.split(key, 4)
    bound1 = 1.0 / jnp.sqrt(dim)
    bound2 = 1.0 / jnp.sqrt(hidden_size)
    w1 = jax.random.uniform(k1, (dim, hidden_size), jnp.float32, -bound1, bound1)
    b1 = jax.random.uniform(k2, (1, hidden_size), jnp.float32, -bound1, bound1)
    w2 = jax.random.uniform(k3, (hidden_size, out_features), jnp.float32, -bound2, bound2)
    b2 = jax.random.uniform(k4, (1, out_features), jnp.float32, -bound2, bound2)
    return w1, b1, w2, b2


if __name__ == "__main__":
    key = jax.random.PRNGKey(0)
    k_x, k_p, k_x2, k_p2 = jax.random.split(key, 4)

    # --- Test 1: tiny shapes, f32 compute, strict reference check -----------
    batch, dim, hidden = 8, 16, 32
    x = jax.random.normal(k_x, (batch, dim), jnp.float32)
    w1, b1, w2, b2 = init_params(k_p, dim, hidden_size=hidden, out_features=20)
    out = jax.block_until_ready(
        network_forward(x, w1, b1, w2, b2, compute_dtype=jnp.float32))
    ref = jnp.maximum(x @ w1 + b1, 0.0) @ w2 + b2
    assert out.shape == (batch, 20)
    assert jnp.allclose(out, ref, atol=1e-5, rtol=1e-5)

    # --- Test 2: multi-tile grid (batch padding) + default bf16 streaming ----
    batch2, dim2, hidden2 = 200, 16, 100
    x2 = jax.random.normal(k_x2, (batch2, dim2), jnp.float32)
    p2 = init_params(k_p2, dim2, hidden_size=hidden2, out_features=20)
    out2 = jax.block_until_ready(network_forward(x2, *p2, block_b=64))
    ref2 = jnp.maximum(x2 @ p2[0] + p2[1], 0.0) @ p2[2] + p2[3]
    assert out2.shape == (batch2, 20)
    assert jnp.allclose(out2, ref2, atol=5e-2, rtol=5e-2)

    # --- Test 3: generation-aware default tile (block_b=None) ---------------
    out3 = jax.block_until_ready(network_forward(x2, *p2))
    assert out3.shape == (batch2, 20)
    assert jnp.allclose(out3, ref2, atol=5e-2, rtol=5e-2)

    print("KERNEL_OK")
</pallas_src>

<mosaic_0001>
module attributes {stable_mosaic.version = 11 : i64} {
  func.func @mlp_kernel(%arg0: i32, %arg1: memref<8x16xf32, #tpu.memory_space<vmem>>, %arg2: memref<16x128xf32, #tpu.memory_space<vmem>>, %arg3: memref<1x128xf32, #tpu.memory_space<vmem>>, %arg4: memref<128x20xf32, #tpu.memory_space<vmem>>, %arg5: memref<1x20xf32, #tpu.memory_space<vmem>>, %arg6: memref<8x20xf32, #tpu.memory_space<vmem>>) attributes {dimension_semantics = [#tpu.dimension_semantics<parallel>], iteration_bounds = array<i64: 1>, scalar_prefetch = 0 : i64, scratch_operands = 0 : i64, tpu.core_type = #tpu.core_type<tc>, window_params = [{transform_indices = @transform_0, window_bounds = array<i64: 8, 16>}, {pipeline_mode = #tpu.pipeline_mode<synchronous>, transform_indices = @transform_1, window_bounds = array<i64: 16, 128>}, {pipeline_mode = #tpu.pipeline_mode<synchronous>, transform_indices = @transform_2, window_bounds = array<i64: 1, 128>}, {pipeline_mode = #tpu.pipeline_mode<synchronous>, transform_indices = @transform_3, window_bounds = array<i64: 128, 20>}, {pipeline_mode = #tpu.pipeline_mode<synchronous>, transform_indices = @transform_4, window_bounds = array<i64: 1, 20>}, {transform_indices = @transform_5, window_bounds = array<i64: 8, 20>}]} {
    %c0 = arith.constant 0 : index
    %c0_0 = arith.constant 0 : index
    %0 = vector.load %arg1[%c0, %c0_0] : memref<8x16xf32, #tpu.memory_space<vmem>>, vector<8x16xf32>
    %c0_1 = arith.constant 0 : index
    %c0_2 = arith.constant 0 : index
    %1 = vector.load %arg2[%c0_1, %c0_2] : memref<16x128xf32, #tpu.memory_space<vmem>>, vector<16x128xf32>
    %cst = arith.constant dense<0.000000e+00> : vector<8x128xf32>
    %2 = tpu.matmul %0, %1, %cst {dimension_numbers = #tpu.dot_dimension_numbers<[1], [0], [0], [1], [0, 0, 1, 1], [], []>} : vector<8x16xf32>, vector<16x128xf32>, vector<8x128xf32> -> vector<8x128xf32>
    %c0_3 = arith.constant 0 : index
    %c0_4 = arith.constant 0 : index
    %3 = vector.load %arg3[%c0_3, %c0_4] : memref<1x128xf32, #tpu.memory_space<vmem>>, vector<1x128xf32>
    %4 = vector.broadcast %3 : vector<1x128xf32> to vector<8x128xf32>
    %5 = arith.addf %2, %4 : vector<8x128xf32>
    %cst_5 = arith.constant 0.000000e+00 : f32
    %6 = vector.broadcast %cst_5 : f32 to vector<8x128xf32>
    %7 = arith.maximumf %5, %6 : vector<8x128xf32>
    %c0_6 = arith.constant 0 : index
    %c0_7 = arith.constant 0 : index
    %8 = vector.load %arg4[%c0_6, %c0_7] : memref<128x20xf32, #tpu.memory_space<vmem>>, vector<128x20xf32>
    %cst_8 = arith.constant dense<0.000000e+00> : vector<8x20xf32>
    %9 = tpu.matmul %7, %8, %cst_8 {dimension_numbers = #tpu.dot_dimension_numbers<[1], [0], [0], [1], [0, 0, 1, 1], [], []>} : vector<8x128xf32>, vector<128x20xf32>, vector<8x20xf32> -> vector<8x20xf32>
    %c0_9 = arith.constant 0 : index
    %c0_10 = arith.constant 0 : index
    %10 = vector.load %arg5[%c0_9, %c0_10] : memref<1x20xf32, #tpu.memory_space<vmem>>, vector<1x20xf32>
    %11 = vector.broadcast %10 : vector<1x20xf32> to vector<8x20xf32>
    %12 = arith.addf %9, %11 : vector<8x20xf32>
    %c0_11 = arith.constant 0 : index
    %c0_12 = arith.constant 0 : index
    %13 = vector.load %arg6[%c0_11, %c0_12] : memref<8x20xf32, #tpu.memory_space<vmem>>, vector<8x20xf32>
    tpu.vector_store %arg6[%c0_11, %c0_12], %12 {strides = array<i32>} : memref<8x20xf32, #tpu.memory_space<vmem>>, vector<8x20xf32>,
    return
  }
  func.func @transform_0(%arg0: i32) -> (i32, i32) {
    %c0_i32 = arith.constant 0 : i32
    %c0_i32_0 = arith.constant 0 : i32
    return %arg0, %c0_i32 : i32, i32
  }
  func.func @transform_1(%arg0: i32) -> (i32, i32) {
    %c0_i32 = arith.constant 0 : i32
    %c0_i32_0 = arith.constant 0 : i32
    %c0_i32_1 = arith.constant 0 : i32
    return %c0_i32, %c0_i32_0 : i32, i32
  }
  func.func @transform_2(%arg0: i32) -> (i32, i32) {
    %c0_i32 = arith.constant 0 : i32
    %c0_i32_0 = arith.constant 0 : i32
    %c0_i32_1 = arith.constant 0 : i32
    return %c0_i32, %c0_i32_0 : i32, i32
  }
  func.func @transform_3(%arg0: i32) -> (i32, i32) {
    %c0_i32 = arith.constant 0 : i32
    %c0_i32_0 = arith.constant 0 : i32
    %c0_i32_1 = arith.constant 0 : i32
    return %c0_i32, %c0_i32_0 : i32, i32
  }
  func.func @transform_4(%arg0: i32) -> (i32, i32) {
    %c0_i32 = arith.constant 0 : i32
    %c0_i32_0 = arith.constant 0 : i32
    %c0_i32_1 = arith.constant 0 : i32
    return %c0_i32, %c0_i32_0 : i32, i32
  }
  func.func @transform_5(%arg0: i32) -> (i32, i32) {
    %c0_i32 = arith.constant 0 : i32
    %c0_i32_0 = arith.constant 0 : i32
    return %arg0, %c0_i32 : i32, i32
  }
}

</mosaic_0001>

<bundles_post_ra>
// kernel: tpu_custom_call.1
= control target key start
LH: loop header
LB: loop body
LE: loop exit
PB: predicated region body
PF: predicated region fallthrough
CT: control target
= control target key end

     0   :  { %v335_v2 = vmov 0.0|0.0   ;;  %vm336_vm0 = vmmov 0   ;;  %v337_v4 = vmov 0.0   ;;  %vm31_vm1 = vcmask 130048   ;;  %s444_s0 = inlined_call_operand.vmem [shape: f32[8,16], index: 0, kind: input, shape index: {}]   ;;  %s445_s1 = inlined_call_operand.vmem [shape: f32[16,128], index: 1, kind: input, shape index: {}]   ;;  %s446_s2 = inlined_call_operand.vmem [shape: f32[1,128], index: 2, kind: input, shape index: {}]   ;;  %s447_s3 = inlined_call_operand.vmem [shape: f32[128,20], index: 3, kind: input, shape index: {}]   ;;  %s448_s4 = inlined_call_operand.vmem [shape: f32[1,20], index: 4, kind: input, shape index: {}]   ;;  %s449_s5 = inlined_call_operand.hbm [shape: f32[8,20], index: 5, kind: output, shape index: {}]  }
   0x1   :  { %v22_v0 = vld [vmem:[%s445_s1] sm:$0xff]  ;;  %v23_v1 = vld [vmem:[%s445_s1 + $0x8] sm:$0xff]  ;;  %280 = vmatprep.subr.bf16.mxu0 %v335_v2  ;;  %242 = vmatprep.mubr.msk.f32.mxu0 %vm336_vm0, %v337_v4  ;;  %v108_v7 = vld [vmem:[%s447_s3 + $0x10] sm:$0xff] }
   0x2   :  { %v281_v3 = vpack.c.bf16 %v23_v1, %v22_v0  ;;  %v106_v5 = vld [vmem:[%s447_s3] sm:$0xff]  ;;  %v107_v6 = vld [vmem:[%s447_s3 + $0x8] sm:$0xff]  ;;  %283 = vmatprep.subr.bf16.mxu1 %v335_v2  ;;  %v109_v9 = vld [vmem:[%s447_s3 + $0x18] sm:$0xff]  ;;  %277 = vmatprep.mubr.msk.f32.mxu1 %vm336_vm0, %v337_v4 }
   0x3   :  { %v284_v8 = vpack.c.bf16 %v107_v6, %v106_v5  ;;  %v21_v10 = vld [vmem:[%s444_s0] sm:$0xff]  ;;  %v287_v11 = vpack.c.bf16 %v109_v9, %v108_v7  ;;  %v111_v13 = vld [vmem:[%s447_s3 + $0x28] sm:$0xff] }
   0x4   :  { %282 = vmatpush3.bf16.msra.mxu0 %v281_v3  ;;  %v110_v12 = vld [vmem:[%s447_s3 + $0x20] sm:$0xff] }
   0x5   :  { %285 = vmatpush3.bf16.msra.mxu1 %v284_v8 }
   0x6   :  { %286 = vmatprep.subr.bf16.mxu1 %v335_v2 }
   0x7   :  { %243 = vmatmul.mubr.msk.f32.vlgmr.msra.gmra.mrb[0].mxu0 %vm31_vm1, %v21_v10 }
   0x8   :  { %10 = vsyncpa [#allocation3], 0  ;;  %v290_v14 = vpack.c.bf16 %v111_v13, %v110_v12  ;;  %v112_v15 = vld [vmem:[%s447_s3 + $0x30] sm:$0xff]  ;;  %v113_v16 = vld [vmem:[%s447_s3 + $0x38] sm:$0xff]  ;;  %s338_s7 = smov [#allocation2]   ;;  %vm199_vm2 = vcmask 162816  }
   0x9   :  { %288 = vmatpush3.bf16.msra.mxu1 %v287_v11  ;;  %v293_v17 = vpack.c.bf16 %v113_v16, %v112_v15  ;;  %v114_v18 = vld [vmem:[%s447_s3 + $0x40] sm:$0xff]  ;;  %v115_v19 = vld [vmem:[%s447_s3 + $0x48] sm:$0xff]  ;;  %v116_v21 = vld [vmem:[%s447_s3 + $0x50] sm:$0xff]  ;;  %s207_s8 = sshll.u32 %s338_s7, 4  ;;  %s208_s8 = int_to_ptr.vmem [resolvable:$true] %s207_s8 }
   0xa   :  { %289 = vmatprep.subr.bf16.mxu1 %v335_v2  ;;  %v296_v20 = vpack.c.bf16 %v115_v19, %v114_v18  ;;  %v117_v22 = vld [vmem:[%s447_s3 + $0x58] sm:$0xff]  ;;  %v118_v24 = vld [vmem:[%s447_s3 + $0x60] sm:$0xff]  ;;  %v119_v25 = vld [vmem:[%s447_s3 + $0x68] sm:$0xff]  ;;  %p316_p1 = scmp.lt.s32.totalorder %s208_s8, %s208_s8 }
   0xb   :  { %v299_v23 = vpack.c.bf16 %v117_v22, %v116_v21  ;;  %v302_v26 = vpack.c.bf16 %v119_v25, %v118_v24  ;;  %v120_v27 = vld [vmem:[%s447_s3 + $0x70] sm:$0xff]  ;;  %v121_v28 = vld [vmem:[%s447_s3 + $0x78] sm:$0xff]  ;;  %v215_v30 = vld [vmem:[%s446_s2] ss:$0 sm:$0xff]  ;;  %s311_s3 = scalar_lea.vmem %s208_s8, 128 }
   0xc   :  { %v305_v29 = vpack.c.bf16 %v121_v28, %v120_v27  ;;  %v217_v35 = vld [vmem:[%s448_s4] ss:$0 sm:$0xff]  ;;  %p312_p0 = scmp.ne.s32.totalorder %s208_s8, %s311_s3  ;;  %p317_p2 = scmp.lt.s32.totalorder %s311_s3, %s311_s3 }
   0xd   :  { %291 = vmatpush3.bf16.msra.mxu1 %v290_v14 }
   0xe   :  { %292 = vmatprep.subr.bf16.mxu1 %v335_v2  ;;  %p318_p3 = por %p317_p2, %p316_p1 }
  0x10   :  { %p319_p4 = pnand %p318_p3, %p312_p0 }
  0x11   :  { %294 = vmatpush3.bf16.msra.mxu1 %v293_v17 }
  0x12   :  { %295 = vmatprep.subr.bf16.mxu1 %v335_v2 }
  0x15   :  { %297 = vmatpush3.bf16.msra.mxu1 %v296_v20 }
  0x16   :  { %298 = vmatprep.subr.bf16.mxu1 %v335_v2 }
  0x19   :  { %300 = vmatpush3.bf16.msra.mxu1 %v299_v23 }
  0x1a   :  { %301 = vmatprep.subr.bf16.mxu1 %v335_v2 }
  0x1d   :  { %303 = vmatpush3.bf16.msra.mxu1 %v302_v26 }
  0x1e   :  { %304 = vmatprep.subr.bf16.mxu1 %v335_v2 }
  0x21   :  { %306 = vmatpush3.bf16.msra.mxu1 %v305_v29 }
  0xda   :  { %v101_v31 = vpop.f32.mrb[0].mxu0 }
  0xdb   :  { %v102_v32 = vadd.f32 %v215_v30, %v101_v31  ;;  %v244_v33 = vpop.f32.mrb[1].mxu0 }
  0xdd   :  { %v105_v34 = vmax.f32 %v102_v32, 0.0 }
  0xdf   :  { %278 = vmatmul.mubr.f32.vlgmr.msra.gmra.mrb[0].mxu1 %v105_v34 }
 0x1b2   :  { %v195_v36 = vpop.f32.mrb[0].mxu1 }
 0x1b3   :  { %v196_v37 = vadd.f32 %v217_v35, %v195_v36  ;;  %v279_v38 = vpop.f32.mrb[1].mxu1 }
 0x1b5   :  { %200 = vst.msk [vmem:[#allocation2] sm:$0xff] %vm199_vm2, %v196_v37 }
 0x1b6   :  { %322 = shalt.err (!%p319_p4)
}
 0x1b7   :  { %s323_s10 = scalar_lea.hbm %s449_s5, 128 }
 0x1b8   :  { %p324_p5 = scmp.ne.s32.totalorder %s449_s5, %s323_s10  ;;  %p327_p6 = scmp.lt.u32.totalorder %s323_s10, %s449_s5 }
 0x1ba   :  { %p329_p7 = pnand %p327_p6, %p324_p5 }
 0x1bc   :  { %332 = shalt.err (!%p329_p7)
}
 0x1bd   :  { %210 = dma.vmem_to_hbm [thread:$0]  %s208_s8, 128, %s449_s5, [#allocation3]  }
 0x1be   :  { %333 = dma.done.wait [#allocation3], 128  }
 0x1bf   :  { %334 = vsyncadd [#allocation3], 4294967168 }
 0x1c0   :  { %214 = vsyncpa [#allocation3], 1 }

</bundles_post_ra>
